<compile_context>
chip_gen: v7x
topology: tpu7x:2x2x1
jax: 0.10.0
libtpu: 0.0.40
codegen_flags: <defaults>
</compile_context>

<pallas_src>
import functools

import jax
import jax.numpy as jnp
from jax.experimental import pallas as pl
from jax.experimental.pallas import tpu as pltpu


def _fnn_kernel(x_ref, *refs, use_bf16=False):
    """Fused MLP forward for one batch tile (batch-in-lanes layout).

    refs = (w0, b0, w1, b1, ..., w_{L-1}, b_{L-1}, out_ref)
      x_ref:   (d0, tm)           activations, batch in lanes (float32)
      w_i:     (d_out_i, d_in_i)  PyTorch nn.Linear layout (f32, or bf16 when
                                  use_bf16 and d_in_i > 8)
      b_i:     (d_out_i, 1)       float32
      out_ref: (d_last, tm)       float32
    Applies tanh after every layer except the last.
    """
    out_ref = refs[-1]
    param_refs = refs[:-1]
    n_layers = len(param_refs) // 2

    h = x_ref[...]                                     # (d0, tm) float32
    for li in range(n_layers):
        w = param_refs[2 * li][...]                    # (d_out, d_in)
        b = param_refs[2 * li + 1][...]                # (d_out, 1) f32
        d_out, d_in = w.shape
        is_last = li == n_layers - 1

        if d_in <= 8:
            # Tiny contraction (e.g. the 2-feature input layer): avoid the
            # MXU round-trip; broadcasted VPU FMAs, bias folded into k=0.
            hf = h.astype(jnp.float32)
            acc = w[:, 0:1].astype(jnp.float32) * hf[0:1, :] + b
            for k in range(1, d_in):
                acc = acc + w[:, k:k + 1].astype(jnp.float32) * hf[k:k + 1, :]
            h = acc                                    # (d_out, tm) f32
        else:
            # MXU matmul with f32 accumulation. In bf16 mode the weights
            # arrive already-cast from the wrapper and h is already bf16
            # after the previous tanh, so no per-step casts are needed.
            rhs = h.astype(w.dtype) if use_bf16 else h
            h = jnp.dot(w, rhs, preferred_element_type=jnp.float32) + b

        if not is_last:
            if use_bf16:
                h = jnp.tanh(h.astype(jnp.bfloat16))   # bf16 EUP (v6e/v7x)
            else:
                h = jnp.tanh(h)                        # f32 EUP, lane-dense

    out_ref[...] = h.astype(out_ref.dtype)


def fnn_forward(x, params, *, tm=4096, use_bf16=False):
    """Run the fused FNN_ forward pass.

    x:      (N, layers[0]) — any N (ragged last tile handled natively,
            no wrapper-side zero-pad materialization).
    params: list of (W, b) with W: (d_out, d_in) [PyTorch layout], b: (d_out, 1)
    tm:     batch tile (lane dimension); multiple of 128. Default 4096
            (sweep 2048-8192 for large N; on v7x keep n_tiles >= 2 so both
            TensorCores are used).
    use_bf16: optional reduced-precision path for v6e/v7x (looser accuracy).
    """
    assert tm % 128 == 0, "batch tile must be a multiple of 128 (lane width)"
    N, d0 = x.shape
    d_last = params[-1][0].shape[0]

    # Clamp the tile to the lane-rounded batch so tiny batches don't pay for
    # a huge mostly-garbage tile.
    tm = max(128, min(tm, pl.cdiv(N, 128) * 128))
    n_tiles = pl.cdiv(N, tm)

    # batch-in-lanes layout: (d0, N).  The ragged final block (N % tm != 0)
    # is handled by Pallas directly (masked load/store), so there is no
    # extra padded copy of the input written to HBM.
    x_t = x.astype(jnp.float32).T

    flat_params = []
    for w, b in params:
        w = w.astype(jnp.float32)
        b = b.astype(jnp.float32)
        if use_bf16 and w.shape[1] > 8:
            w = w.astype(jnp.bfloat16)   # cast ONCE here, not per grid step
        flat_params.extend([w, b])

    # x is tiled over the batch (lanes); the small weights/biases are passed
    # as full-array VMEM-resident blocks for every grid step (tiny DMAs).
    in_specs = [pl.BlockSpec((d0, tm), lambda i: (0, i))]
    for p in flat_params:
        in_specs.append(pl.BlockSpec(p.shape, lambda i: (0, 0)))

    out_specs = pl.BlockSpec((d_last, tm), lambda i: (0, i))

    out_t = pl.pallas_call(
        functools.partial(_fnn_kernel, use_bf16=use_bf16),
        out_shape=jax.ShapeDtypeStruct((d_last, N), jnp.float32),
        grid_spec=pltpu.PrefetchScalarGridSpec(
            num_scalar_prefetch=0,
            grid=(n_tiles,),
            in_specs=in_specs,
            out_specs=out_specs,
        ),
        compiler_params=pltpu.CompilerParams(
            dimension_semantics=("parallel",),
        ),
    )(x_t, *flat_params)

    # Back to (N, d_last).
    return out_t.T


def init_params(layers, key):
    """Deterministic init mimicking nn.Linear's default U(-1/sqrt(fan_in), +)."""
    params = []
    for i in range(len(layers) - 1):
        d_in, d_out = layers[i], layers[i + 1]
        key, kw, kb = jax.random.split(key, 3)
        bound = 1.0 / float(d_in) ** 0.5
        w = jax.random.uniform(kw, (d_out, d_in), jnp.float32, -bound, bound)
        b = jax.random.uniform(kb, (d_out, 1), jnp.float32, -bound, bound)
        params.append((w, b))
    return params


def fnn_reference(x, params):
    """Pure-JAX reference of the same forward pass (float32, high-precision dots)."""
    h = x.astype(jnp.float32)
    n = len(params)
    for li, (w, b) in enumerate(params):
        h = jnp.dot(h, w.T, precision=jax.lax.Precision.HIGHEST) + b[:, 0]
        if li != n - 1:
            h = jnp.tanh(h)
    return h


if __name__ == "__main__":
    # layers = [in, hidden, hidden, out], typical PINN-style FNN_ config.
    layers = [2, 32, 32, 1]
    batch = 300   # deliberately NOT a multiple of the tile -> exercises the
                  # ragged (masked) final block path
    tm = 256      # small tile for the demo; production default is 4096

    key = jax.random.PRNGKey(0)
    key, kx = jax.random.split(key)
    x = jax.random.normal(kx, (batch, layers[0]), dtype=jnp.float32)

    params = init_params(layers, key)

    out = fnn_forward(x, params, tm=tm)
    out = jax.block_until_ready(out)

    ref = fnn_reference(x, params)
    assert out.shape == (batch, layers[-1])
    assert jnp.allclose(out, ref, atol=1e-4, rtol=1e-4), "mismatch vs reference"

    print("KERNEL_OK")
</pallas_src>

<mosaic_0001>
module attributes {stable_mosaic.version = 11 : i64} {
  func.func @_fnn_kernel(%arg0: i32, %arg1: memref<2x256xf32, #tpu.memory_space<vmem>>, %arg2: memref<32x2xf32, #tpu.memory_space<vmem>>, %arg3: memref<32x1xf32, #tpu.memory_space<vmem>>, %arg4: memref<32x32xf32, #tpu.memory_space<vmem>>, %arg5: memref<32x1xf32, #tpu.memory_space<vmem>>, %arg6: memref<1x32xf32, #tpu.memory_space<vmem>>, %arg7: memref<1x1xf32, #tpu.memory_space<vmem>>, %arg8: memref<1x256xf32, #tpu.memory_space<vmem>>) attributes {dimension_semantics = [#tpu.dimension_semantics<parallel>], iteration_bounds = array<i64: 2>, scalar_prefetch = 0 : i64, scratch_operands = 0 : i64, tpu.core_type = #tpu.core_type<tc>, window_params = [{transform_indices = @transform_0, window_bounds = array<i64: 2, 256>}, {pipeline_mode = #tpu.pipeline_mode<synchronous>, transform_indices = @transform_1, window_bounds = array<i64: 32, 2>}, {pipeline_mode = #tpu.pipeline_mode<synchronous>, transform_indices = @transform_2, window_bounds = array<i64: 32, 1>}, {pipeline_mode = #tpu.pipeline_mode<synchronous>, transform_indices = @transform_3, window_bounds = array<i64: 32, 32>}, {pipeline_mode = #tpu.pipeline_mode<synchronous>, transform_indices = @transform_4, window_bounds = array<i64: 32, 1>}, {pipeline_mode = #tpu.pipeline_mode<synchronous>, transform_indices = @transform_5, window_bounds = array<i64: 1, 32>}, {pipeline_mode = #tpu.pipeline_mode<synchronous>, transform_indices = @transform_6, window_bounds = array<i64: 1, 1>}, {transform_indices = @transform_7, window_bounds = array<i64: 1, 256>}]} {
    %c0 = arith.constant 0 : index
    %c0_0 = arith.constant 0 : index
    %0 = vector.load %arg1[%c0, %c0_0] : memref<2x256xf32, #tpu.memory_space<vmem>>, vector<2x256xf32>
    %c0_1 = arith.constant 0 : index
    %c0_2 = arith.constant 0 : index
    %1 = vector.load %arg2[%c0_1, %c0_2] : memref<32x2xf32, #tpu.memory_space<vmem>>, vector<32x2xf32>
    %c0_3 = arith.constant 0 : index
    %c0_4 = arith.constant 0 : index
    %2 = vector.load %arg3[%c0_3, %c0_4] : memref<32x1xf32, #tpu.memory_space<vmem>>, vector<32x1xf32>
    %3 = vector.extract_strided_slice %1 {offsets = [0, 0], sizes = [32, 1], strides = [1, 1]} : vector<32x2xf32> to vector<32x1xf32>
    %4 = vector.extract_strided_slice %0 {offsets = [0, 0], sizes = [1, 256], strides = [1, 1]} : vector<2x256xf32> to vector<1x256xf32>
    %5 = vector.broadcast %3 : vector<32x1xf32> to vector<32x256xf32>
    %6 = vector.broadcast %4 : vector<1x256xf32> to vector<32x256xf32>
    %7 = arith.mulf %5, %6 : vector<32x256xf32>
    %8 = vector.broadcast %2 : vector<32x1xf32> to vector<32x256xf32>
    %9 = arith.addf %7, %8 : vector<32x256xf32>
    %10 = vector.extract_strided_slice %1 {offsets = [0, 1], sizes = [32, 1], strides = [1, 1]} : vector<32x2xf32> to vector<32x1xf32>
    %11 = vector.extract_strided_slice %0 {offsets = [1, 0], sizes = [1, 256], strides = [1, 1]} : vector<2x256xf32> to vector<1x256xf32>
    %12 = vector.broadcast %10 : vector<32x1xf32> to vector<32x256xf32>
    %13 = vector.broadcast %11 : vector<1x256xf32> to vector<32x256xf32>
    %14 = arith.mulf %12, %13 : vector<32x256xf32>
    %15 = arith.addf %9, %14 : vector<32x256xf32>
    %16 = math.tanh %15 : vector<32x256xf32>
    %c0_5 = arith.constant 0 : index
    %c0_6 = arith.constant 0 : index
    %17 = vector.load %arg4[%c0_5, %c0_6] : memref<32x32xf32, #tpu.memory_space<vmem>>, vector<32x32xf32>
    %c0_7 = arith.constant 0 : index
    %c0_8 = arith.constant 0 : index
    %18 = vector.load %arg5[%c0_7, %c0_8] : memref<32x1xf32, #tpu.memory_space<vmem>>, vector<32x1xf32>
    %cst = arith.constant dense<0.000000e+00> : vector<32x256xf32>
    %19 = tpu.matmul %17, %16, %cst {dimension_numbers = #tpu.dot_dimension_numbers<[1], [0], [0], [1], [0, 0, 1, 1], [], []>} : vector<32x32xf32>, vector<32x256xf32>, vector<32x256xf32> -> vector<32x256xf32>
    %20 = vector.broadcast %18 : vector<32x1xf32> to vector<32x256xf32>
    %21 = arith.addf %19, %20 : vector<32x256xf32>
    %22 = math.tanh %21 : vector<32x256xf32>
    %c0_9 = arith.constant 0 : index
    %c0_10 = arith.constant 0 : index
    %23 = vector.load %arg6[%c0_9, %c0_10] : memref<1x32xf32, #tpu.memory_space<vmem>>, vector<1x32xf32>
    %c0_11 = arith.constant 0 : index
    %c0_12 = arith.constant 0 : index
    %24 = vector.load %arg7[%c0_11, %c0_12] : memref<1x1xf32, #tpu.memory_space<vmem>>, vector<1x1xf32>
    %cst_13 = arith.constant dense<0.000000e+00> : vector<1x256xf32>
    %25 = tpu.matmul %23, %22, %cst_13 {dimension_numbers = #tpu.dot_dimension_numbers<[1], [0], [0], [1], [0, 0, 1, 1], [], []>} : vector<1x32xf32>, vector<32x256xf32>, vector<1x256xf32> -> vector<1x256xf32>
    %26 = vector.broadcast %24 : vector<1x1xf32> to vector<1x256xf32>
    %27 = arith.addf %25, %26 : vector<1x256xf32>
    %c0_14 = arith.constant 0 : index
    %c0_15 = arith.constant 0 : index
    %28 = vector.load %arg8[%c0_14, %c0_15] : memref<1x256xf32, #tpu.memory_space<vmem>>, vector<1x256xf32>
    tpu.vector_store %arg8[%c0_14, %c0_15], %27 {strides = array<i32>} : memref<1x256xf32, #tpu.memory_space<vmem>>, vector<1x256xf32>,
    return
  }
  func.func @transform_0(%arg0: i32) -> (i32, i32) {
    %c0_i32 = arith.constant 0 : i32
    %c0_i32_0 = arith.constant 0 : i32
    return %c0_i32, %arg0 : i32, i32
  }
  func.func @transform_1(%arg0: i32) -> (i32, i32) {
    %c0_i32 = arith.constant 0 : i32
    %c0_i32_0 = arith.constant 0 : i32
    %c0_i32_1 = arith.constant 0 : i32
    return %c0_i32, %c0_i32_0 : i32, i32
  }
  func.func @transform_2(%arg0: i32) -> (i32, i32) {
    %c0_i32 = arith.constant 0 : i32
    %c0_i32_0 = arith.constant 0 : i32
    %c0_i32_1 = arith.constant 0 : i32
    return %c0_i32, %c0_i32_0 : i32, i32
  }
  func.func @transform_3(%arg0: i32) -> (i32, i32) {
    %c0_i32 = arith.constant 0 : i32
    %c0_i32_0 = arith.constant 0 : i32
    %c0_i32_1 = arith.constant 0 : i32
    return %c0_i32, %c0_i32_0 : i32, i32
  }
  func.func @transform_4(%arg0: i32) -> (i32, i32) {
    %c0_i32 = arith.constant 0 : i32
    %c0_i32_0 = arith.constant 0 : i32
    %c0_i32_1 = arith.constant 0 : i32
    return %c0_i32, %c0_i32_0 : i32, i32
  }
  func.func @transform_5(%arg0: i32) -> (i32, i32) {
    %c0_i32 = arith.constant 0 : i32
    %c0_i32_0 = arith.constant 0 : i32
    %c0_i32_1 = arith.constant 0 : i32
    return %c0_i32, %c0_i32_0 : i32, i32
  }
  func.func @transform_6(%arg0: i32) -> (i32, i32) {
    %c0_i32 = arith.constant 0 : i32
    %c0_i32_0 = arith.constant 0 : i32
    %c0_i32_1 = arith.constant 0 : i32
    return %c0_i32, %c0_i32_0 : i32, i32
  }
  func.func @transform_7(%arg0: i32) -> (i32, i32) {
    %c0_i32 = arith.constant 0 : i32
    %c0_i32_0 = arith.constant 0 : i32
    return %c0_i32, %arg0 : i32, i32
  }
}

</mosaic_0001>

<bundles_post_ra>
// kernel: tpu_custom_call.1
= control target key start
LH: loop header
LB: loop body
LE: loop exit
PB: predicated region body
PF: predicated region fallthrough
CT: control target
= control target key end

     0   :  { %s1190_s0 = inlined_call_operand.vmem [shape: f32[2,300], index: 0, kind: input, shape index: {}]   ;;  %s1191_s1 = inlined_call_operand.vmem [shape: f32[32,2], index: 1, kind: input, shape index: {}]   ;;  %s1192_s2 = inlined_call_operand.vmem [shape: f32[32,1], index: 2, kind: input, shape index: {}]   ;;  %s1193_s3 = inlined_call_operand.vmem [shape: f32[32,32], index: 3, kind: input, shape index: {}]   ;;  %s1194_s4 = inlined_call_operand.vmem [shape: f32[32,1], index: 4, kind: input, shape index: {}]   ;;  %s1195_s5 = inlined_call_operand.vmem [shape: f32[1,32], index: 5, kind: input, shape index: {}]   ;;  %s1196_s6 = inlined_call_operand.<no memory space> [shape: f32[1,1], index: 6, kind: input, shape index: {}]   ;;  %s1197_s7 = inlined_call_operand.hbm [shape: f32[1,300], index: 7, kind: output, shape index: {}]  }
   0x1   :  { %v12_v0 = vstv %s1196_s6 }
   0x2   :  { %13 = vst [vmem:[#allocation2] sm:$0x1] %v12_v0 }
   0x3   :  { %14 = vsyncpa [#allocation4], 0 }
   0x4   :  { %16 = vsyncpa [#allocation4 + $0x1], 0  ;;  %s1003_s26 = smov 0   ;;  %s1005_s27 = smov 0  }
   0x5   :  { %s1007_s28 = smov 0   ;;  %s1009_s29 = smov 0  }
   0x6 LB: > { %s1024_s6 = sadd.s32 4294967295, %s953_s29   ;;  %s773_s30 = sadd.s32 4294967294, %s953_s29   ;;  %s953_s29 = sphi %s1009_s29, %s1203_s29   ;;  %s949_s28 = sphi %s1007_s28, %s1202_s28   ;;  %s945_s27 = sphi %s1005_s27, %s1201_s27   ;;  %s941_s26 = sphi %s1003_s26, %s1200_s26  }
   0x7   : > { %s1028_s8 = sadd.s32 1, %s953_s29   ;;  %s181_s9 = sadd.s32 1, %s949_s28 }
   0x8   : > { %s178_s10 = ssub.s32 %s953_s29, %s1028_s8  ;;  %p191_p0 = scmp.ne.s32.totalorder %s949_s28, %s945_s27 }
   0x9   : > { %p179_p1 = scmp.eq.s32.totalorder %s178_s10, 0  ;;  %p192_p2 = scmp.eq.s32.totalorder %s1024_s6, 1 }
   0xa   : > { %p197_p3 = scmp.ne.s32.totalorder %s945_s27, %s941_s26  ;;  %p198_p4 = scmp.eq.s32.totalorder %s773_s30, 1 }
   0xb   : > { %s1039_s11 = scalar_select %p179_p1, %s949_s28, %s181_s9  }
   0xc   : > { %p1041_p5 = por %p192_p2, %p191_p0  ;;  %p1045_p6 = por %p198_p4, %p197_p3 }
   0xd   : > { %p776_p7 = scmp.ge.s32.totalorder %s953_s29, 1  ;;  %p251_p8 = scmp.lt.s32.totalorder %s953_s29, 3 }
   0xf   : > { %p252_p9 = pnand %p776_p7, %p251_p8 }
  0x10   : > { %v311_v1 = vld [vmem:[%s1192_s2] sm:$0xff] (!%p252_p9)  ;;  %v955_v3 = vmov (!%p252_p9), 0   ;;  %v312_v4 = vld [vmem:[%s1192_s2 + $0x8] sm:$0xff] (!%p252_p9)  ;;  %v310_v6 = vld [vmem:[%s1191_s1 + $0x18] sm:$0xff] (!%p252_p9)  ;;  %v956_v7 = vmov (!%p252_p9), 1   ;;  %v957_v11 = vmov (!%p252_p9), 0.0   ;;  %v336_v17 = vlaneseq (!%p252_p9) }
  0x11   : > { %255 = sbr.rel (%p252_p9) target bundleno = 688 (0x2b0), region = 48  ;;  %v307_v2 = vld [vmem:[%s1191_s1] sm:$0xff] (!%p252_p9)  ;;  %852 = vset.pattern.permute.xlu1 (!%p252_p9), %v955_v3  ;;  %851 = vset.pattern.permute.xlu0 (!%p252_p9), %v955_v3  ;;  %v308_v5 = vld [vmem:[%s1191_s1 + $0x8] sm:$0xff] (!%p252_p9)  ;;  %v309_v8 = vld [vmem:[%s1191_s1 + $0x10] sm:$0xff] (!%p252_p9)  ;;  %s1090_s23 = sshll.u32 (!%p252_p9), %s1024_s6, 1  ;;  %vm476_vm0 = vcmask (!%p252_p9), 261120  }
  0x12   : > { %364 = vperm.xlu1 (!%p252_p9), %852, %v311_v1   ;;  %317 = vperm.xlu0 (!%p252_p9), %851, %v307_v2   ;;  %v313_v9 = vld [vmem:[%s1192_s2 + $0x10] sm:$0xff] (!%p252_p9)  ;;  %v314_v10 = vld [vmem:[%s1192_s2 + $0x18] sm:$0xff] (!%p252_p9)  ;;  %v452_v12 = vld [vmem:[%s1194_s4] sm:$0xff] (!%p252_p9)  ;;  %p292_p10 = scmp.lt.s32.totalorder (!%p252_p9), %s1090_s23, 2  ;;  %v1095_v18 = vshrl.u32 (!%p252_p9), %v336_v17, 7  ;;  %vm691_vm1 = vcmp.lt.s32.totalorder (!%p252_p9), %v336_v17, 256 }
  0x13   : > { %553 = vmatprep.mubr.f32.mxu0 (!%p252_p9), %v957_v11  ;;  %664 = vmatprep.mubr.f32.mxu1 (!%p252_p9), %v957_v11  ;;  %v453_v13 = vld [vmem:[%s1194_s4 + $0x8] sm:$0xff] (!%p252_p9)  ;;  %v454_v14 = vld [vmem:[%s1194_s4 + $0x10] sm:$0xff] (!%p252_p9)  ;;  %v587_v15 = vld [vmem:[#allocation2] sm:$0x1] (!%p252_p9) }
  0x14   : > { %v455_v16 = vld [vmem:[%s1194_s4 + $0x18] sm:$0xff] (!%p252_p9)  ;;  %v1101_v19 = vsub.s32 (!%p252_p9), 0, %v1095_v18  ;;  %v342_v20 = vsub.s32 (!%p252_p9), 2, %v1095_v18  ;;  %v408_v22 = vsub.s32 (!%p252_p9), 1, %v1095_v18  ;;  %v412_v23 = vsub.s32 (!%p252_p9), 3, %v1095_v18 }
  0x16   : > { %369 = vperm.xlu1 (!%p252_p9), %852, %v312_v4   ;;  %322 = vperm.xlu0 (!%p252_p9), %851, %v308_v5  }
  0x18   : > { %s293_s24 = scalar_select %p292_p10, %s1090_s23, 2 }
  0x19   : > { %s703_s14 = ssub.s32 (%p1041_p5), 3, %s1090_s23 }
  0x1a   : > { %853 = vset.pattern.permute.xlu1 %v956_v7  ;;  %332 = vperm.xlu0 %851, %v310_v6   ;;  %s779_s25 = sshll.u32 %s293_s24, 1  ;;  %p704_p11 = scmp.lt.s32.totalorder (%p1041_p5), %s703_s14, 2 }
  0x1b   : > { %395 = vperm.xlu1 %853, %v308_v5   ;;  %s295_s10 = scalar_lea.vmem %s1190_s0, %s779_s25  ;;  %s284_s25 = sand.u32 1, %s945_s27  }
  0x1c   : > { %v306_v21 = vld [vmem:[%s295_s10] sm:$0xf]  ;;  %s777_s30 = sshll.u32 %s284_s25, 1  ;;  %s1136_s10 = scalar_lea.sflag [#allocation4], %s284_s25 }
  0x1d   : > { %v339_v26 = vrot.slane %v306_v21, %v1101_v19  ;;  %v343_v27 = vrot.slane %v306_v21, %v342_v20  ;;  %v409_v28 = vrot.slane %v306_v21, %v408_v22  ;;  %v413_v29 = vrot.slane %v306_v21, %v412_v23  ;;  %s286_s9 = scalar_lea.vmem [#allocation3], %s777_s30 }
  0x1e   : > { %855 = vset.pattern.permute.xlu0 %v956_v7 }
  0x1f   : > { %854 = vset.pattern.permute.xlu1 %v955_v3  ;;  %391 = vperm.xlu0 %855, %v307_v2   ;;  %v349_v30 = vrot.slane %v339_v26, %v1101_v19  ;;  %v353_v33 = vrot.slane %v343_v27, %v1101_v19  ;;  %v419_v35 = vrot.slane %v409_v28, %v408_v22  ;;  %v448_v28 = vld [vmem:[%s1193_s3] sm:$0xff] }
  0x20   : > { %327 = vperm.xlu1 %854, %v309_v8   ;;  %v423_v36 = vrot.slane %v413_v29, %v408_v22  ;;  %v449_v29 = vld [vmem:[%s1193_s3 + $0x8] sm:$0xff] }
  0x23   : > { %399 = vperm.xlu0 %855, %v309_v8  }
  0x24   : > { %374 = vperm.xlu1 %854, %v313_v9  }
  0x27   : > { %858 = vset.pattern.permute.xlu0 %v955_v3 }
  0x28   : > { %379 = vperm.xlu1 %854, %v314_v10   ;;  %463 = vperm.xlu0 %858, %v453_v13  }
  0x2c   : > { %856 = vset.pattern.permute.xlu1 %v956_v7  ;;  %590 = vperm.xlu0 %858, %v587_v15  }
  0x2d   : > { %403 = vperm.xlu1 %856, %v310_v6  }
  0x31   : > { %857 = vset.pattern.permute.xlu1 %v955_v3 }
  0x32   : > { %458 = vperm.xlu1 %857, %v452_v12  }
  0x36   : > { %468 = vperm.xlu1 %857, %v454_v14  }
  0x3a   : > { %473 = vperm.xlu1 %857, %v455_v16  }
  0x91   : > { %v365_v24 = vpop.permute.xlu1 %364  ;;  %v318_v25 = vpop.permute.xlu0 %317 }
  0x92   : > { %v354_v39 = vmul.f32 %v349_v30, %v318_v25  ;;  %v355_v41 = vmul.f32 %v353_v33, %v318_v25 }
  0x94   : > { %v382_v49 = vadd.f32 %v365_v24, %v354_v39  ;;  %v383_v50 = vadd.f32 %v365_v24, %v355_v41 }
  0x95   : > { %v370_v31 = vpop.permute.xlu1 %369  ;;  %v323_v32 = vpop.permute.xlu0 %322 }
  0x96   : > { %v356_v34 = vmul.f32 %v349_v30, %v323_v32  ;;  %v357_v37 = vmul.f32 %v353_v33, %v323_v32 }
  0x98   : > { %v384_v42 = vadd.f32 %v370_v31, %v356_v34  ;;  %v385_v45 = vadd.f32 %v370_v31, %v357_v37  ;;  %v451_v31 = vld [vmem:[%s1193_s3 + $0x18] sm:$0xff] }
  0x99   : > { %v333_v38 = vpop.permute.xlu0 %332 }
  0x9a   : > { %v396_v40 = vpop.permute.xlu1 %395  ;;  %v360_v2 = vmul.f32 %v349_v30, %v333_v38  ;;  %v361_v3 = vmul.f32 %v353_v33, %v333_v38 }
  0x9b   : > { %v426_v43 = vmul.f32 %v419_v35, %v396_v40  ;;  %v427_v44 = vmul.f32 %v423_v36, %v396_v40 }
  0x9d   : > { %v434_v46 = vadd.f32 %v426_v43, %v384_v42  ;;  %v435_v47 = vadd.f32 %v427_v44, %v385_v45 }
  0x9e   : > { %v392_v48 = vpop.permute.xlu0 %391 }
  0x9f   : > { %v424_v51 = vmul.f32 %v419_v35, %v392_v48  ;;  %v425_v52 = vmul.f32 %v423_v36, %v392_v48  ;;  %v328_v53 = vpop.permute.xlu1 %327  ;;  %859 = vtanh.f32 %v434_v46 }
  0xa0   : > { %861 = vtanh.f32 %v435_v47  ;;  %v358_v58 = vmul.f32 %v349_v30, %v328_v53  ;;  %v359_v59 = vmul.f32 %v353_v33, %v328_v53  ;;  %v450_v30 = vld [vmem:[%s1193_s3 + $0x10] sm:$0xff] }
  0xa1   : > { %v432_v54 = vadd.f32 %v424_v51, %v382_v49  ;;  %v433_v55 = vadd.f32 %v425_v52, %v383_v50 }
  0xa2   : > { %v400_v57 = vpop.permute.xlu0 %399 }
  0xa3   : > { %863 = vtanh.f32 %v432_v54  ;;  %v375_v56 = vpop.permute.xlu1 %374  ;;  %v428_v61 = vmul.f32 %v419_v35, %v400_v57  ;;  %v429_v0 = vmul.f32 %v423_v36, %v400_v57 }
  0xa4   : > { %865 = vtanh.f32 %v433_v55  ;;  %v386_v60 = vadd.f32 %v375_v56, %v358_v58  ;;  %v387_v63 = vadd.f32 %v375_v56, %v359_v59 }
  0xa6   : > { %v436_v4 = vadd.f32 %v428_v61, %v386_v60  ;;  %v437_v6 = vadd.f32 %v429_v0, %v387_v63  ;;  %v586_v63 = vld [vmem:[%s1195_s5] sm:$0x1]  ;;  %v958_v0 = vmov 1966171168  }
  0xa7   : > { %v380_v62 = vpop.permute.xlu1 %379  ;;  %v464_v37 = vpop.permute.xlu0 %463 }
  0xa8   : > { %v388_v9 = vadd.f32 %v380_v62, %v360_v2  ;;  %v389_v10 = vadd.f32 %v380_v62, %v361_v3  ;;  %867 = vtanh.f32 %v436_v4 }
  0xa9   : > { %v860_v1 = vpop.eup %859  ;;  %869 = vtanh.f32 %v437_v6 }
  0xaa   : > { %v862_v5 = vpop.eup %861 }
  0xab   : > { %v591_v2 = vpop.permute.xlu0 %590 }
  0xac   : > { %v404_v7 = vpop.permute.xlu1 %403  ;;  %v596_v4 = vrot.slane %v591_v2, %v1101_v19 }
  0xad   : > { %v864_v8 = vpop.eup %863  ;;  %v430_v12 = vmul.f32 %v419_v35, %v404_v7  ;;  %v431_v13 = vmul.f32 %v423_v36, %v404_v7 }
  0xae   : > { %v866_v14 = vpop.eup %865  ;;  %v795_v15 = vpack.c.bf16 %v860_v1, %v864_v8  ;;  %v675_v1 = vunpack.c.l.s4 %v958_v0 }
  0xaf   : > { %v438_v16 = vadd.f32 %v430_v12, %v388_v9  ;;  %v439_v20 = vadd.f32 %v431_v13, %v389_v10  ;;  %v793_v21 = vpack.c.bf16 %v862_v5, %v866_v14 }
  0xb0   : > { %v676_v3 = vunpack.c.0.s8 %v675_v1 }
  0xb1   : > { %871 = vtanh.f32 %v438_v16  ;;  %794 = vmatprep.subr.bf16.mxu0 %v793_v21  ;;  %v459_v32 = vpop.permute.xlu1 %458 }
  0xb2   : > { %873 = vtanh.f32 %v439_v20  ;;  %796 = vmatpush1.bf16.msra.mxu0 %v795_v15  ;;  %v868_v22 = vpop.eup %867  ;;  %v679_v9 = vsub.s32 %v676_v3, %v1095_v18 }
  0xb3   : > { %v870_v23 = vpop.eup %869 }
  0xb5   : > { %v469_v41 = vpop.permute.xlu1 %468 }
  0xb9   : > { %v474_v46 = vpop.permute.xlu1 %473 }
  0xbb   : > { %v872_v24 = vpop.eup %871 }
  0xbc   : > { %v874_v25 = vpop.eup %873  ;;  %v799_v26 = vpack.c.bf16 %v872_v24, %v868_v22 }
  0xbd   : > { %v797_v27 = vpack.c.bf16 %v874_v25, %v870_v23 }
  0xbf   : > { %798 = vmatprep.subr.bf16.mxu0 %v797_v27 }
  0xc0   : > { %800 = vmatpush1.bf16.msra.mxu0 %v799_v26 }
  0xc3   : > { %780 = vmatmul.mubr.msk.f32.vlgmr.msra.gmra.mrb[0].mxu0 %vm476_vm0, %v448_v28 }
  0xc4   : > { %559 = vmatprep.mubr.f32.mxu0 %v957_v11 }
  0xc7   : > { %781 = vmatmul.mubr.msk.f32.gmra.mrb[2].mxu0 %vm476_vm0, %v449_v29 }
  0xc8   : > { %565 = vmatprep.mubr.f32.mxu0 %v957_v11 }
  0xcb   : > { %782 = vmatmul.mubr.msk.f32.gmra.mrb[4].mxu0 %vm476_vm0, %v450_v30 }
  0xcc   : > { %571 = vmatprep.mubr.f32.mxu0 %v957_v11 }
  0xcf   : > { %783 = vmatmul.mubr.msk.f32.gmra.mrb[6].mxu0 %vm476_vm0, %v451_v31 }
 0x196   : > { %v555_v33 = vpop.f32.mrb[0].mxu0 }
 0x197   : > { %v556_v34 = vadd.f32 %v555_v33, %v459_v32  ;;  %v557_v35 = vpop.f32.mrb[1].mxu0 }
 0x198   : > { %v558_v36 = vadd.f32 %v557_v35, %v459_v32 }
 0x199   : > { %875 = vtanh.f32 %v556_v34 }
 0x19a   : > { %v561_v38 = vpop.f32.mrb[2].mxu0  ;;  %877 = vtanh.f32 %v558_v36 }
 0x19b   : > { %v562_v39 = vadd.f32 %v561_v38, %v464_v37  ;;  %v563_v40 = vpop.f32.mrb[3].mxu0 }
 0x19c   : > { %v564_v42 = vadd.f32 %v563_v40, %v464_v37 }
 0x19d   : > { %879 = vtanh.f32 %v562_v39 }
 0x19e   : > { %881 = vtanh.f32 %v564_v42  ;;  %v567_v11 = vpop.f32.mrb[4].mxu0 }
 0x19f   : > { %v568_v43 = vadd.f32 %v567_v11, %v469_v41  ;;  %v569_v44 = vpop.f32.mrb[5].mxu0 }
 0x1a0   : > { %v570_v45 = vadd.f32 %v569_v44, %v469_v41 }
 0x1a1   : > { %883 = vtanh.f32 %v568_v43 }
 0x1a2   : > { %v573_v47 = vpop.f32.mrb[6].mxu0  ;;  %885 = vtanh.f32 %v570_v45 }
 0x1a3   : > { %v574_v48 = vadd.f32 %v573_v47, %v474_v46  ;;  %v575_v49 = vpop.f32.mrb[7].mxu0  ;;  %v876_v51 = vpop.eup %875 }
 0x1a4   : > { %v576_v50 = vadd.f32 %v575_v49, %v474_v46  ;;  %v878_v52 = vpop.eup %877 }
 0x1a5   : > { %887 = vtanh.f32 %v574_v48 }
 0x1a6   : > { %889 = vtanh.f32 %v576_v50 }
 0x1a7   : > { %v880_v53 = vpop.eup %879 }
 0x1a8   : > { %v882_v54 = vpop.eup %881  ;;  %v803_v55 = vpack.c.bf16 %v880_v53, %v876_v51 }
 0x1a9   : > { %v801_v56 = vpack.c.bf16 %v882_v54, %v878_v52 }
 0x1ab   : > { %802 = vmatprep.subr.bf16.mxu1 %v801_v56  ;;  %v884_v57 = vpop.eup %883 }
 0x1ac   : > { %804 = vmatpush1.bf16.msra.mxu1 %v803_v55  ;;  %v886_v58 = vpop.eup %885 }
 0x1af   : > { %v888_v59 = vpop.eup %887 }
 0x1b0   : > { %v890_v60 = vpop.eup %889  ;;  %v807_v61 = vpack.c.bf16 %v888_v59, %v884_v57 }
 0x1b1   : > { %v805_v62 = vpack.c.bf16 %v890_v60, %v886_v58 }
 0x1b3   : > { %806 = vmatprep.subr.bf16.mxu1 %v805_v62 }
 0x1b4   : > { %808 = vmatpush1.bf16.msra.mxu1 %v807_v61 }
 0x1b7   : > { %784 = vmatmul.mubr.msk.f32.vlgmr.msra.gmra.mrb[0].mxu1 %vm476_vm0, %v586_v63 }
 0x28a   : > { %v666_v5 = vpop.f32.mrb[0].mxu1 }
 0x28b   : > { %v667_v6 = vadd.f32 %v666_v5, %v596_v4  ;;  %v668_v7 = vpop.f32.mrb[1].mxu1 }
 0x28c   : > { %v669_v8 = vadd.f32 %v668_v7, %v596_v4 }
 0x28e   : > { %v673_v10 = vcombine.low %v667_v6, %v669_v8  ;;  %701 = sbr.rel (!%p1041_p5) target bundleno = 688 (0x2b0), region = 52 }
 0x290   : > { %v680_v12 = vrot.slane %v673_v10, %v679_v9 }
 0x292   : > { %v687_v13 = vrot.slane %v680_v12, %v679_v9 }
 0x294   : > { %693 = vst.msk [vmem:[%s286_s9] sm:$0x3] %vm691_vm1, %v687_v13 }
 0x295   : > { %s1205_s14 = smov (!%p704_p11, %s703_s14), 2 }
 0x296   : > { %s1141_s15 = sshll.u32 %s1205_s14, 4 }
 0x297   : > { %s708_s16 = ssub.s32 32, %s1141_s15 }
 0x298   : > { %709 = vsyncadd %s1136_s10, %s708_s16  ;;  %p788_p12 = scmp.ne.s32.totalorder %s1141_s15, 0  ;;  %s792_s17 = sshll.u32 %s1024_s6, 5 }
 0x299   : > { %s1150_s12 = scalar_lea.hbm %s1197_s7, %s792_s17  ;;  %s714_s20 = sshll.u32 %s286_s9, 4  ;;  %s715_s20 = int_to_ptr.vmem [resolvable:$true] %s714_s20 }
 0x29a   : > { %s891_s23 = scalar_lea.vmem %s715_s20, %s1141_s15  ;;  %s959_s21 = smov [#allocation3]  }
 0x29b   : > { %p892_p13 = scmp.ne.s32.totalorder %s715_s20, %s891_s23  ;;  %s895_s22 = sshll.u32 %s959_s21, 4  ;;  %s896_s22 = int_to_ptr.vmem [resolvable:$false] %s895_s22 }
 0x29c   : > { %s897_s24 = scalar_lea.vmem %s896_s22, 64  ;;  %p898_p2 = scmp.lt.s32.totalorder %s715_s20, %s896_s22 }
 0x29d   : > { %p893_p0 = pnand %p892_p13, %p788_p12  ;;  %p899_p3 = scmp.lt.s32.totalorder %s897_s24, %s891_s23 }
 0x29f   : > { %p894_p1 = pneg %p893_p0  ;;  %p900_p4 = por %p899_p3, %p898_p2 }
 0x2a1   : > { %p901_p5 = pnand %p900_p4, %p894_p1 }
 0x2a3   : > { %904 = shalt.err (!%p901_p5)
}
 0x2a4   : > { %s905_s6 = scalar_lea.hbm %s1150_s12, %s1141_s15  ;;  %s909_s9 = scalar_lea.hbm %s1197_s7, 48 }
 0x2a5   : > { %p906_p7 = scmp.ne.s32.totalorder %s1150_s12, %s905_s6  ;;  %p910_p10 = scmp.lt.u32.totalorder %s1150_s12, %s1197_s7 }
 0x2a6   : > { %p911_p11 = scmp.lt.u32.totalorder %s909_s9, %s905_s6  ;;  %p913_p0 = scmp.lt.u32.totalorder %s905_s6, %s1150_s12 }
 0x2a7   : > { %p907_p8 = pnand %p906_p7, %p788_p12 }
 0x2a8   : > { %p912_p13 = por %p911_p11, %p910_p10 }
 0x2a9   : > { %p908_p9 = pneg %p907_p8 }
 0x2aa   : > { %p914_p1 = por %p913_p0, %p912_p13 }
 0x2ac   : > { %p915_p2 = pnand %p914_p1, %p908_p9 }
 0x2ae   : > { %918 = shalt.err (!%p915_p2)
}
 0x2af   : > { %717 = dma.vmem_to_hbm [thread:$0]  (%p788_p12), %s715_s20, %s1141_s15, %s1150_s12, %s1136_s10  }
 0x2b0 PF: > { %p814_p3 = scmp.ge.s32.totalorder %s953_s29, 2  ;;  %s726_s17 = sand.u32 1, %s941_s26  }
 0x2b1   : > { %s727_s18 = scalar_lea.sflag [#allocation4], %s726_s17 }
 0x2b2   : > { %p811_p4 = pnand %p814_p3, %p1045_p6 }
 0x2b4   : > { %936 = dma.done.wait (!%p811_p4), %s727_s18, 32  }
 0x2b5   : > { %938 = vsyncadd (!%p811_p4), %s727_s18, 4294967264  ;;  %p19_p5 = scmp.ge.s32.totalorder %s1028_s8, 4   ;;  %s1200_s26 = smov %s945_s27 }
 0x2b6   : > { %s1201_s27 = smov %s949_s28  ;;  %s1202_s28 = smov %s1039_s11 }
 0x2b7   : > { %s1203_s29 = smov %s1028_s8  ;;  %21 = sbr.rel (!%p19_p5) target bundleno = 6 (0x6), region = 83 }
 0x2be   :  { %732 = vsyncpa [#allocation4], 1 }
 0x2bf   :  { %734 = vsyncpa [#allocation4 + $0x1], 1 }

</bundles_post_ra>
